<compile_context>
chip_gen: v7x
topology: tpu7x:2x2x1
jax: 0.10.0
libtpu: 0.0.40
codegen_flags: <defaults>
</compile_context>

<pallas_src>
import jax
import jax.numpy as jnp
from jax import lax
from jax.experimental import pallas as pl
from jax.experimental.pallas import tpu as pltpu


def _round_up(x, m):
    return ((x + m - 1) // m) * m


# Largest double-buffered x tile we are willing to hold in VMEM.  Safe on all
# generations because vmem_limit_bytes is set explicitly below (v5e/v6e have
# 128 MiB physical VMEM, v7x has 64 MiB), and far past the HBM-roofline
# plateau for tile size.
_X_TILE_BUDGET_BYTES = 24 * 1024 * 1024


def qa_head_kernel(x_ref, m_ref, w_ref, b_ref, out_ref):
    # x_ref:   (tm, H) tile of sequence_output rows (f32 or bf16)
    # m_ref:   (1, tm) lane-dense per-row attention mask (f32)
    # w_ref:   (2, H)  qa_outputs weight (torch [out, in] layout), x dtype
    # b_ref:   (2,)    qa_outputs bias, f32, in SMEM
    # out_ref: (2, tm) lane-dense qa_logits tile, f32
    #
    # (2, tm) = (2, H) . (tm, H)^T on the MXU with f32 accumulation; no
    # in-kernel transpose, and the output block is lane-dense.
    logits = lax.dot_general(
        w_ref[...], x_ref[...],
        dimension_numbers=(((1,), (1,)), ((), ())),
        preferred_element_type=jnp.float32)            # (2, tm), f32

    # Mask applied AFTER the matmul, in f32:  (x*m) @ W == (x @ W) * m.
    # (1, tm) mask broadcasts along sublanes (free); no tm x H VPU multiply.
    masked = logits * m_ref[...]
    out_ref[0:1, :] = masked[0:1, :] + b_ref[0]
    out_ref[1:2, :] = masked[1:2, :] + b_ref[1]


def _choose_tm(M, H, itemsize, x_budget_bytes=_X_TILE_BUDGET_BYTES):
    """Row tile size.

    Either a multiple of 128 (so the lane-dense mask/output blocks use
    unmasked full-lane stores and padded tail blocks are legal) or exactly M
    (block dims == full array dims) for small inputs.
    """
    per_row = 2 * H * itemsize                         # double-buffered x row
    cap = max(128, (x_budget_bytes // max(per_row, 1)) // 128 * 128)
    if M > cap:
        return cap
    if M >= 256:
        # Split into >= 2 grid steps so both v7x TensorCores get work.
        return min(cap, max(128, _round_up((M + 1) // 2, 128)))
    return max(M, 1)


def qa_head(sequence_output, weight, bias, attention_mask=None, *, tm=None):
    """sequence_output: [B, S, H] (f32 or bf16); weight: [2, H]; bias: [2];
    attention_mask: optional [B, S].  Returns (start_logits, end_logits),
    f32 of shape [B, S] each."""
    B, S, H = sequence_output.shape
    M = B * S
    x = sequence_output.reshape(M, H)                  # free row-major reshape

    if attention_mask is None:
        mask = jnp.ones((1, M), dtype=jnp.float32)
    else:
        mask = attention_mask.reshape(1, M).astype(jnp.float32)

    w2 = weight.astype(x.dtype)                        # (2, H), tiny, resident
    b2 = bias.reshape(2).astype(jnp.float32)           # (2,) -> SMEM

    itemsize = jnp.dtype(x.dtype).itemsize
    if tm is None:
        tm = _choose_tm(M, H, itemsize)
    grid = (pl.cdiv(M, tm),)

    # Explicit scoped-VMEM limit: double-buffered x + mask + out + weight
    # + slack.  Portable across generation-specific defaults.
    tm_l = _round_up(tm, 128)
    vmem_limit = (2 * tm * H * itemsize                # x (double-buffered)
                  + 2 * 8 * tm_l * 4                   # mask (sublane-padded)
                  + 2 * 8 * tm_l * 4                   # out  (sublane-padded)
                  + 2 * 8 * _round_up(H, 128) * itemsize  # weight
                  + (2 << 20))                         # slack
    vmem_limit = int(min(max(vmem_limit, 8 << 20), 48 << 20))

    cost = pl.CostEstimate(
        flops=int(4 * M * H),
        transcendentals=0,
        bytes_accessed=int(M * H * itemsize + 12 * M + 2 * H * itemsize + 8))

    out = pl.pallas_call(
        qa_head_kernel,
        out_shape=jax.ShapeDtypeStruct((2, M), jnp.float32),
        grid_spec=pltpu.PrefetchScalarGridSpec(
            num_scalar_prefetch=0,
            grid=grid,
            in_specs=[
                pl.BlockSpec((tm, H), lambda i: (i, 0)),   # streamed x rows
                pl.BlockSpec((1, tm), lambda i: (0, i)),   # lane-dense mask
                pl.BlockSpec((2, H), lambda i: (0, 0)),    # constant weight
                pl.BlockSpec(memory_space=pltpu.MemorySpace.SMEM),  # bias
            ],
            out_specs=pl.BlockSpec((2, tm), lambda i: (0, i)),  # lane-dense
        ),
        compiler_params=pltpu.CompilerParams(
            dimension_semantics=("parallel",),
            vmem_limit_bytes=vmem_limit),
        cost_estimate=cost,
    )(x, mask, w2, b2)

    # .split(1, dim=-1) + .squeeze(-1): free contiguous views of the (2, M) out.
    start_logits = out[0].reshape(B, S)
    end_logits = out[1].reshape(B, S)
    return start_logits, end_logits


def model_forward(input_ids, embedding_table, qa_weight, qa_bias,
                  attention_mask=None):
    # Encoder substitute (glue, plain JAX): deterministic embedding lookup.
    # TODO(synk): replace with real xlm_roberta encoder — no clean Pallas
    # equivalent for a pretrained transformer checkpoint.
    sequence_output = embedding_table[input_ids]       # [B, S, H]
    # mask effect is applied inside the Pallas kernel (post-matmul, f32)
    return qa_head(sequence_output, qa_weight, qa_bias, attention_mask)


if __name__ == "__main__":
    # Small config consistent with the module's forward.
    B, S, H, VOCAB = 2, 8, 32, 64
    initializer_range = 0.02

    key = jax.random.PRNGKey(0)
    k_ids, k_emb, k_w, k_ids2, k_msk2 = jax.random.split(key, 5)

    input_ids = jax.random.randint(k_ids, (B, S), 0, VOCAB, dtype=jnp.int32)
    attention_mask = jnp.ones((B, S), dtype=jnp.int32)

    # Deterministic parameter init (matches _init_weights for qa_outputs):
    embedding_table = jax.random.normal(k_emb, (VOCAB, H), dtype=jnp.float32)
    qa_weight = initializer_range * jax.random.normal(
        k_w, (2, H), dtype=jnp.float32)                # nn.Linear(H, 2).weight
    qa_bias = jnp.zeros((2,), dtype=jnp.float32)

    # --- 1) f32 path ---------------------------------------------------------
    start_logits, end_logits = model_forward(
        input_ids, embedding_table, qa_weight, qa_bias, attention_mask)
    jax.block_until_ready((start_logits, end_logits))

    seq_out = embedding_table[input_ids]
    ref = (seq_out @ qa_weight.T) * attention_mask[..., None] + qa_bias
    assert start_logits.shape == (B, S) and end_logits.shape == (B, S)
    assert jnp.allclose(start_logits, ref[..., 0], atol=1e-5)
    assert jnp.allclose(end_logits, ref[..., 1], atol=1e-5)

    # --- 2) bf16 path (half the HBM bytes; f32 accumulation on the MXU) ------
    start_bf, end_bf = model_forward(
        input_ids, embedding_table.astype(jnp.bfloat16), qa_weight, qa_bias,
        attention_mask)
    jax.block_until_ready((start_bf, end_bf))

    seq_bf = embedding_table.astype(jnp.bfloat16)[input_ids].astype(jnp.float32)
    w_bf = qa_weight.astype(jnp.bfloat16).astype(jnp.float32)
    ref_bf = (seq_bf @ w_bf.T) * attention_mask[..., None] + qa_bias
    assert jnp.allclose(start_bf, ref_bf[..., 0], atol=1e-2)
    assert jnp.allclose(end_bf, ref_bf[..., 1], atol=1e-2)

    # --- 3) small non-power-of-two M (single block, block dims == array dims)
    B2, S2 = 3, 8                                      # M = 24
    ids2 = jax.random.randint(k_ids2, (B2, S2), 0, VOCAB, dtype=jnp.int32)
    msk2 = (jax.random.uniform(k_msk2, (B2, S2)) > 0.25).astype(jnp.int32)
    seq2 = embedding_table[ids2]
    s2, e2 = qa_head(seq2, qa_weight, qa_bias, msk2)
    jax.block_until_ready((s2, e2))
    ref2 = (seq2 @ qa_weight.T) * msk2[..., None] + qa_bias
    assert jnp.allclose(s2, ref2[..., 0], atol=1e-5)
    assert jnp.allclose(e2, ref2[..., 1], atol=1e-5)

    # --- 4) multi-step grid with padded tail block (M = 320, tm = 256) -------
    B4, S4 = 5, 64                                     # M = 320
    k_ids4, k_msk4 = jax.random.split(k_msk2)
    ids4 = jax.random.randint(k_ids4, (B4, S4), 0, VOCAB, dtype=jnp.int32)
    msk4 = (jax.random.uniform(k_msk4, (B4, S4)) > 0.25).astype(jnp.int32)
    seq4 = embedding_table[ids4]
    s4, e4 = qa_head(seq4, qa_weight, qa_bias, msk4)
    jax.block_until_ready((s4, e4))
    ref4 = (seq4 @ qa_weight.T) * msk4[..., None] + qa_bias
    assert jnp.allclose(s4, ref4[..., 0], atol=1e-5)
    assert jnp.allclose(e4, ref4[..., 1], atol=1e-5)

    print("KERNEL_OK")
</pallas_src>

<mosaic_0001>
module attributes {stable_mosaic.version = 11 : i64} {
  func.func @qa_head_kernel(%arg0: i32, %arg1: memref<16x32xf32, #tpu.memory_space<vmem>>, %arg2: memref<1x16xf32, #tpu.memory_space<vmem>>, %arg3: memref<2x32xf32, #tpu.memory_space<vmem>>, %arg4: memref<2xf32, #tpu.memory_space<smem>>, %arg5: memref<2x16xf32, #tpu.memory_space<vmem>>) attributes {dimension_semantics = [#tpu.dimension_semantics<parallel>], iteration_bounds = array<i64: 1>, scalar_prefetch = 0 : i64, scratch_operands = 0 : i64, tpu.core_type = #tpu.core_type<tc>, window_params = [{transform_indices = @transform_0, window_bounds = array<i64: 16, 32>}, {transform_indices = @transform_1, window_bounds = array<i64: 1, 16>}, {pipeline_mode = #tpu.pipeline_mode<synchronous>, transform_indices = @transform_2, window_bounds = array<i64: 2, 32>}, {transform_indices = @transform_3, window_bounds = array<i64: 2>}, {transform_indices = @transform_4, window_bounds = array<i64: 2, 16>}]} {
    %c0 = arith.constant 0 : index
    %c0_0 = arith.constant 0 : index
    %0 = vector.load %arg3[%c0, %c0_0] : memref<2x32xf32, #tpu.memory_space<vmem>>, vector<2x32xf32>
    %c0_1 = arith.constant 0 : index
    %c0_2 = arith.constant 0 : index
    %1 = vector.load %arg1[%c0_1, %c0_2] : memref<16x32xf32, #tpu.memory_space<vmem>>, vector<16x32xf32>
    %cst = arith.constant dense<0.000000e+00> : vector<2x16xf32>
    %2 = tpu.matmul %0, %1, %cst {dimension_numbers = #tpu.dot_dimension_numbers<[1], [1], [0], [0], [0, 0, 1, 0], [], []>} : vector<2x32xf32>, vector<16x32xf32>, vector<2x16xf32> -> vector<2x16xf32>
    %c0_3 = arith.constant 0 : index
    %c0_4 = arith.constant 0 : index
    %3 = vector.load %arg2[%c0_3, %c0_4] : memref<1x16xf32, #tpu.memory_space<vmem>>, vector<1x16xf32>
    %4 = vector.broadcast %3 : vector<1x16xf32> to vector<2x16xf32>
    %5 = arith.mulf %2, %4 : vector<2x16xf32>
    %6 = vector.extract_strided_slice %5 {offsets = [0, 0], sizes = [1, 16], strides = [1, 1]} : vector<2x16xf32> to vector<1x16xf32>
    %c0_5 = arith.constant 0 : index
    %7 = memref.load %arg4[%c0_5] : memref<2xf32, #tpu.memory_space<smem>>
    %8 = vector.broadcast %7 : f32 to vector<1x16xf32>
    %9 = arith.addf %6, %8 : vector<1x16xf32>
    %c0_6 = arith.constant 0 : index
    %c0_7 = arith.constant 0 : index
    %10 = vector.load %arg5[%c0_6, %c0_7] : memref<2x16xf32, #tpu.memory_space<vmem>>, vector<1x16xf32>
    tpu.vector_store %arg5[%c0_6, %c0_7], %9 {strides = array<i32>} : memref<2x16xf32, #tpu.memory_space<vmem>>, vector<1x16xf32>,
    %11 = vector.extract_strided_slice %5 {offsets = [1, 0], sizes = [1, 16], strides = [1, 1]} : vector<2x16xf32> to vector<1x16xf32>
    %c1 = arith.constant 1 : index
    %12 = memref.load %arg4[%c1] : memref<2xf32, #tpu.memory_space<smem>>
    %13 = vector.broadcast %12 : f32 to vector<1x16xf32>
    %14 = arith.addf %11, %13 : vector<1x16xf32>
    %c1_8 = arith.constant 1 : index
    %c0_9 = arith.constant 0 : index
    %15 = vector.load %arg5[%c1_8, %c0_9] : memref<2x16xf32, #tpu.memory_space<vmem>>, vector<1x16xf32>
    tpu.vector_store %arg5[%c1_8, %c0_9], %14 {strides = array<i32>} : memref<2x16xf32, #tpu.memory_space<vmem>>, vector<1x16xf32>,
    return
  }
  func.func @transform_0(%arg0: i32) -> (i32, i32) {
    %c0_i32 = arith.constant 0 : i32
    %c0_i32_0 = arith.constant 0 : i32
    return %arg0, %c0_i32 : i32, i32
  }
  func.func @transform_1(%arg0: i32) -> (i32, i32) {
    %c0_i32 = arith.constant 0 : i32
    %c0_i32_0 = arith.constant 0 : i32
    return %c0_i32, %arg0 : i32, i32
  }
  func.func @transform_2(%arg0: i32) -> (i32, i32) {
    %c0_i32 = arith.constant 0 : i32
    %c0_i32_0 = arith.constant 0 : i32
    %c0_i32_1 = arith.constant 0 : i32
    return %c0_i32, %c0_i32_0 : i32, i32
  }
  func.func @transform_3(%arg0: i32) -> i32 {
    %c0_i32 = arith.constant 0 : i32
    %c0_i32_0 = arith.constant 0 : i32
    return %c0_i32 : i32
  }
  func.func @transform_4(%arg0: i32) -> (i32, i32) {
    %c0_i32 = arith.constant 0 : i32
    %c0_i32_0 = arith.constant 0 : i32
    return %c0_i32, %arg0 : i32, i32
  }
}

</mosaic_0001>

<bundles_post_ra>
// kernel: tpu_custom_call.1
= control target key start
LH: loop header
LB: loop body
LE: loop exit
PB: predicated region body
PF: predicated region fallthrough
CT: control target
= control target key end

     0   :  { %9 = vsyncpa [#allocation3], 0  ;;  %s317_s0 = inlined_call_operand.hbm [shape: f32[16,32], index: 0, kind: input, shape index: {}]   ;;  %s318_s1 = inlined_call_operand.vmem [shape: f32[1,16], index: 1, kind: input, shape index: {}]   ;;  %s319_s2 = inlined_call_operand.vmem [shape: f32[2,32], index: 2, kind: input, shape index: {}]   ;;  %s320_s3 = inlined_call_operand.vmem [shape: f32[2], index: 3, kind: input, shape index: {}]   ;;  %s321_s4 = inlined_call_operand.hbm [shape: f32[2,16], index: 4, kind: output, shape index: {}]  }
   0x1   :  { %10 = vsyncpa [#allocation5], 0 }
   0x2   :  { %11 = vsyncpa [#allocation4], 0  ;;  %s251_s15 = smov [#allocation2]   ;;  %s34_s19 = sshll.u32 %s320_s3, 4  ;;  %s35_s19 = int_to_ptr.vmem [resolvable:$true] %s34_s19 }
   0x3   :  { %s17_s16 = sshll.u32 %s251_s15, 4  ;;  %s189_s22 = scalar_lea.hbm %s317_s0, 256  ;;  %s18_s16 = int_to_ptr.vmem [resolvable:$true] %s17_s16 }
   0x4   :  { %p190_p0 = scmp.ne.s32.totalorder %s317_s0, %s189_s22  ;;  %p193_p1 = scmp.lt.u32.totalorder %s189_s22, %s317_s0 }
   0x6   :  { %p195_p2 = pnand %p193_p1, %p190_p0 }
   0x8   :  { %198 = shalt.err (!%p195_p2)
}
   0x9   :  { %s199_s27 = scalar_lea.vmem %s18_s16, 256  ;;  %p204_p4 = scmp.lt.s32.totalorder %s18_s16, %s18_s16 }
   0xa   :  { %p200_p3 = scmp.ne.s32.totalorder %s18_s16, %s199_s27  ;;  %p205_p5 = scmp.lt.s32.totalorder %s199_s27, %s199_s27 }
   0xc   :  { %p206_p6 = por %p205_p5, %p204_p4 }
   0xe   :  { %p207_p7 = pnand %p206_p6, %p200_p3 }
  0x10   :  { %210 = shalt.err (!%p207_p7)
}
  0x11   :  { %s252_s3 = smov 128   ;;  %s253_s28 = smov 8  }
  0x12   :  { %23 = dma.hbm_to_vmem [thread:$0]  %s317_s0, 256, %s18_s16, [#allocation3], %s252_s3, %s252_s3, %s253_s28  }
  0x13   :  { %s211_s5 = scalar_lea.vmem %s35_s19, 16  ;;  %p216_p9 = scmp.lt.s32.totalorder %s35_s19, %s35_s19 }
  0x14   :  { %p212_p8 = scmp.ne.s32.totalorder %s35_s19, %s211_s5  ;;  %p217_p10 = scmp.lt.s32.totalorder %s211_s5, %s211_s5 }
  0x16   :  { %p218_p11 = por %p217_p10, %p216_p9 }
  0x18   :  { %p219_p12 = pnand %p218_p11, %p212_p8 }
  0x1a   :  { %222 = shalt.err (!%p219_p12)
}
  0x1b   :  { %s254_s6 = smov [#allocation6]  }
  0x1c   :  { %37 = dma.vmem_to_smem %s35_s19, 16, %s254_s6, [#allocation5]  }
  0x1d   :  { %245 = dma.done.wait [#allocation3], 256  }
  0x1e   :  { %246 = vsyncadd [#allocation3], 4294967040 }
  0x1f   :  { %247 = dma.done.wait [#allocation5], 16  }
  0x20   :  { %248 = vsyncadd [#allocation5], 4294967280 }
  0x21   :  { %44 = sfence }
  0x22   :  { %v46_v0 = vld [vmem:[#allocation2] sm:$0xff]  ;;  %v47_v1 = vld [vmem:[#allocation2 + $0x8] sm:$0xff]  ;;  %vm48_vm0 = vcmask 261120   ;;  %v255_v2 = vmov 0.0|0.0   ;;  %vm256_vm2 = vmmov 0   ;;  %v257_v4 = vmov 0.0  }
  0x23   :  { %177 = vmatprep.subr.bf16.mxu0 %v255_v2  ;;  %v178_v3 = vpack.c.bf16 %v47_v1, %v46_v0  ;;  %vm179_vm1 = vmpackc.low %vm48_vm0, %vm48_vm0  ;;  %174 = vmatprep.mubr.msk.f32.mxu0 %vm256_vm2, %v257_v4  ;;  %v45_v5 = vld [vmem:[%s319_s2] sm:$0x3]  ;;  %s136_s8 = sld [smem:[#allocation6]]  ;;  %s166_s9 = sld [smem:[#allocation6 + $0x1]]  ;;  %vm139_vm3 = vcmask 122880   ;;  %vm144_vm4 = vcmask 123905  }
  0x24   :  { %v165_v6 = vld [vmem:[%s318_s1] ss:$0 sm:$0xff]  ;;  %s258_s12 = smov [#allocation7]  }
  0x25   :  { %180 = vmatpush3.bf16.xpose.msk.msra.mxu0 %vm179_vm1, %v178_v3  ;;  %s152_s13 = sshll.u32 %s258_s12, 4  ;;  %s153_s13 = int_to_ptr.vmem [resolvable:$true] %s152_s13 }
  0x26   :  { %s223_s2 = scalar_lea.vmem %s153_s13, 32  ;;  %p228_p0 = scmp.lt.s32.totalorder %s153_s13, %s153_s13 }
  0x27   :  { %p224_p13 = scmp.ne.s32.totalorder %s153_s13, %s223_s2  ;;  %p229_p1 = scmp.lt.s32.totalorder %s223_s2, %s223_s2 }
  0x29   :  { %v137_v8 = vstv %s136_s8  ;;  %v142_v9 = vstv %s166_s9  ;;  %p230_p2 = por %p229_p1, %p228_p0 }
  0x2b   :  { %p231_p3 = pnand %p230_p2, %p224_p13 }
  0x2c   :  { %175 = vmatmul.mubr.msk.f32.vlgmr.msra.gmra.mrb[0].mxu0 %vm48_vm0, %v45_v5 }
  0xff   :  { %v124_v7 = vpop.f32.mrb[0].mxu0 }
 0x100   :  { %v135_v10 = vmul.f32 %v165_v6, %v124_v7  ;;  %v176_v11 = vpop.f32.mrb[1].mxu0 }
 0x102   :  { %v138_v12 = vadd.f32 %v137_v8, %v135_v10  ;;  %v143_v13 = vadd.f32 %v142_v9, %v135_v10 }
 0x104   :  { %140 = vst.msk [vmem:[#allocation7] sm:$0x1] %vm139_vm3, %v138_v12 }
 0x105   :  { %145 = vst.msk [vmem:[#allocation7] sm:$0x2] %vm144_vm4, %v143_v13 }
 0x106   :  { %234 = shalt.err (!%p231_p3)
}
 0x107   :  { %s235_s15 = scalar_lea.hbm %s321_s4, 32 }
 0x108   :  { %p236_p4 = scmp.ne.s32.totalorder %s321_s4, %s235_s15  ;;  %p239_p5 = scmp.lt.u32.totalorder %s235_s15, %s321_s4 }
 0x10a   :  { %p241_p6 = pnand %p239_p5, %p236_p4 }
 0x10c   :  { %244 = shalt.err (!%p241_p6)
}
 0x10d   :  { %155 = dma.vmem_to_hbm [thread:$0]  %s153_s13, 32, %s321_s4, [#allocation4]  }
 0x10e   :  { %249 = dma.done.wait [#allocation4], 32  }
 0x10f   :  { %250 = vsyncadd [#allocation4], 4294967264 }
 0x110   :  { %159 = vsyncpa [#allocation3], 1 }
 0x111   :  { %160 = vsyncpa [#allocation4], 1 }
 0x112   :  { %161 = vsyncpa [#allocation5], 1 }

</bundles_post_ra>
